<compile_context>
chip_gen: v7x
topology: tpu7x:2x2x1
jax: 0.10.0
libtpu: 0.0.40
codegen_flags: <defaults>
</compile_context>

<pallas_src>
import functools

import jax
import jax.numpy as jnp
from jax.experimental import pallas as pl
from jax.experimental.pallas import tpu as pltpu

TOKEN_SELF_ATTN_VALUE = -5e4  # same constant as reformer_pytorch
CAUSAL_MASK_VALUE = -1e38


# ----------------------------------------------------------------------------------
# small helpers
# ----------------------------------------------------------------------------------
def _l2_normalize(x, eps=1e-12):
    # F.normalize(x, p=2, dim=-1): x / max(||x||, eps) == x * rsqrt(max(||x||^2, eps^2))
    n2 = jnp.sum(x * x, axis=-1, keepdims=True)
    return x * jax.lax.rsqrt(jnp.maximum(n2, jnp.float32(eps * eps)))


def _tpu_vmem_plan():
    """(per-step working-set budget, scoped vmem_limit_bytes) per TPU generation."""
    cap = 128 << 20
    try:
        info = pltpu.get_tpu_info()
        cap = int(getattr(info, "vmem_capacity_bytes", cap) or cap)
    except Exception:
        pass
    if cap <= (64 << 20):          # v7x-class: 64 MiB physical VMEM, 2 TCs/chip
        return 12 << 20, 32 << 20
    return 28 << 20, 64 << 20      # v5e / v6e: 128 MiB physical VMEM


# ----------------------------------------------------------------------------------
# Pallas linear projection (row-tiled, bf16 MXU operands, f32 accumulation)
# ----------------------------------------------------------------------------------
def _linear_kernel(x_ref, w_ref, o_ref):
    x = x_ref[...]
    if x.dtype != jnp.bfloat16:
        x = x.astype(jnp.bfloat16)
    acc = jnp.dot(x, w_ref[...], preferred_element_type=jnp.float32)
    o_ref[...] = acc.astype(o_ref.dtype)


def _linear_bias_kernel(x_ref, w_ref, b_ref, o_ref):
    x = x_ref[...]
    if x.dtype != jnp.bfloat16:
        x = x.astype(jnp.bfloat16)
    acc = jnp.dot(x, w_ref[...], preferred_element_type=jnp.float32)
    o_ref[...] = (acc + b_ref[...]).astype(o_ref.dtype)


def _choose_row_tile(m):
    for tm in (512, 256, 128, 64, 32, 16, 8):
        if m % tm == 0:
            return tm
    return m  # single full block


def pallas_linear(x2d, w, b=None, out_dtype=None):
    """x2d: [M, K], w: [K, N] (pre-cast to bf16 by caller), optional bias [N]."""
    m, k = x2d.shape
    n = w.shape[1]
    out_dtype = out_dtype or x2d.dtype
    tm = _choose_row_tile(m)
    grid = (m // tm,)
    x_spec = pl.BlockSpec((tm, k), lambda i: (i, 0))
    w_spec = pl.BlockSpec((k, n), lambda i: (0, 0))
    o_spec = pl.BlockSpec((tm, n), lambda i: (i, 0))
    out_shape = jax.ShapeDtypeStruct((m, n), out_dtype)
    cp = pltpu.CompilerParams(dimension_semantics=("parallel",))
    if b is None:
        return pl.pallas_call(
            _linear_kernel, out_shape=out_shape, grid=grid,
            in_specs=[x_spec, w_spec], out_specs=o_spec, compiler_params=cp,
        )(x2d, w)
    b_spec = pl.BlockSpec((1, n), lambda i: (0, 0))
    return pl.pallas_call(
        _linear_bias_kernel, out_shape=out_shape, grid=grid,
        in_specs=[x_spec, w_spec, b_spec], out_specs=o_spec, compiler_params=cp,
    )(x2d, w, b.reshape(1, n))


# ----------------------------------------------------------------------------------
# LSH chunk-attention kernel (concat-j, single softmax pass, lane-dense output)
# ----------------------------------------------------------------------------------
def _lsh_attn_kernel(bqk_ref, bqk_bnd_ref, bv_ref, bv_bnd_ref, bt_ref, bt_bnd_ref,
                     bo_ref, lse_ref, *, scale, causal):
    # bqk_ref:     (1, CT, L, D) bf16  sorted shared-QK tile
    # bqk_bnd_ref: (1, 1,  L, D) bf16  chunk preceding this tile (wraparound)
    # bv_ref:      (1, CT, L, D) bf16  values tile
    # bv_bnd_ref:  (1, 1,  L, D) bf16
    # bt_ref:      (1, CT, L)    int32 original token positions of the tile
    # bt_bnd_ref:  (1, 1,  L)    int32 positions of the boundary chunk
    # bo_ref:      (1, CT, L*D)  bf16  lane-dense output
    # lse_ref:     (1, CT, L)    f32
    CT, L, D = bqk_ref.shape[1], bqk_ref.shape[2], bqk_ref.shape[3]

    qk = bqk_ref[0].astype(jnp.float32)            # (CT, L, D)
    qk_bnd = bqk_bnd_ref[0, 0].astype(jnp.float32)  # (L, D)

    # shared-QK: queries = qk * scale, keys = l2-normalized qk (normalize each chunk ONCE)
    q = (qk * jnp.float32(scale)).astype(jnp.bfloat16)
    k_c = _l2_normalize(qk).astype(jnp.bfloat16)          # (CT, L, D)
    k_bnd = _l2_normalize(qk_bnd).astype(jnp.bfloat16)    # (L, D)

    v_c = bv_ref[0]          # (CT, L, D) bf16
    v_bnd = bv_bnd_ref[0]    # (1,  L, D) bf16

    # look-one-back stacks built from the already-normalized current chunks plus the
    # single boundary chunk (no fp32 VMEM stitch, no duplicate normalization)
    if CT > 1:
        k_p = jnp.concatenate([k_bnd[None], k_c[:-1]], axis=0)
        v_p = jnp.concatenate([v_bnd, v_c[:-1]], axis=0)
    else:
        k_p = k_bnd[None]
        v_p = v_bnd

    k_all = jnp.concatenate([k_c, k_p], axis=1)   # (CT, 2L, D)
    v_all = jnp.concatenate([v_c, v_p], axis=1)   # (CT, 2L, D)

    tq = bt_ref[0]          # (CT, L) int32
    t_bnd = bt_bnd_ref[0]   # (1,  L) int32
    t_p = jnp.concatenate([t_bnd, tq[:-1]], axis=0) if CT > 1 else t_bnd
    t_all = jnp.concatenate([tq, t_p], axis=1)    # (CT, 2L)

    # ONE QK^T against the concatenated key axis (f32 accumulation on the MXU)
    dots = jnp.einsum('cid,cjd->cij', q, k_all,
                      preferred_element_type=jnp.float32)   # (CT, L, 2L)

    # one position-delta tensor, masks applied in a single pass
    delta = tq[:, :, None] - t_all[:, None, :]              # (CT, L, 2L) int32
    if causal:
        dots = jnp.where(delta < 0, jnp.float32(CAUSAL_MASK_VALUE), dots)
    # mask attention to self (shared-QK); positions are original token indices,
    # so the same token appearing in the look-back chunk from another round is
    # masked too (matches reformer_pytorch).
    dots = jnp.where(delta == 0, jnp.float32(TOKEN_SELF_ATTN_VALUE), dots)

    # single-exp softmax (f32), approx reciprocal on the EUP
    m = jnp.max(dots, axis=-1, keepdims=True)
    e = jnp.exp(dots - m)
    s = jnp.sum(e, axis=-1, keepdims=True)
    inv = pl.reciprocal(s, approx=True)
    p = (e * inv).astype(jnp.bfloat16)

    bo = jnp.einsum('cij,cjd->cid', p, v_all,
                    preferred_element_type=jnp.float32)      # (CT, L, D)

    # lane-dense store: flatten (L, D) -> L*D before the write
    bo_ref[0] = bo.astype(jnp.bfloat16).reshape(CT, L * D)
    lse_ref[0] = (m + jnp.log(s))[..., 0]


def _per_chunk_vmem_bytes(L, D):
    # double-buffered pipeline I/O (bf16 qk/v/bo, int32 positions, f32 lse)
    io = 2 * L * D * 2 + L * 4 + L * D * 2 + L * 4
    # in-kernel intermediates: f32 qk/bo, bf16 q/k/v (incl. 2L concats), f32 scores
    scores = 3 * L * (2 * L) * 4 + L * (2 * L) * 2
    dense = L * D * (4 + 4) + 6 * L * D * 2
    return 2 * io + scores + dense


def _choose_chunk_tile(n_chunks, L, D, max_chunk_tile, vmem_budget_bytes):
    """Largest CT with CT | n_chunks, CT % 8 == 0 (or CT == n_chunks), fitting budget."""
    per_chunk = _per_chunk_vmem_bytes(L, D)
    valid = [ct for ct in range(n_chunks, 0, -1)
             if n_chunks % ct == 0 and (ct % 8 == 0 or ct == n_chunks)]
    if max_chunk_tile is not None:
        capped = [ct for ct in valid if ct <= max_chunk_tile]
        valid = capped or valid
    for ct in valid:  # descending: biggest tile that fits the budget
        if ct * per_chunk <= vmem_budget_bytes:
            return ct
    return valid[-1]


def pallas_chunk_attention(bqk, bv, bq_t, *, scale, causal, max_chunk_tile=None):
    BH, n_chunks, L, D = bqk.shape
    budget, vmem_limit = _tpu_vmem_plan()
    CT = _choose_chunk_tile(n_chunks, L, D, max_chunk_tile, budget)
    n_tiles = n_chunks // CT
    kernel = functools.partial(_lsh_attn_kernel, scale=scale, causal=causal)

    def cur4(b, c):
        return (b, c, 0, 0)

    def bnd4(b, c):
        # chunk immediately preceding this tile, wrapping across the chunk axis
        return (b, (c * CT + n_chunks - 1) % n_chunks, 0, 0)

    def cur3(b, c):
        return (b, c, 0)

    def bnd3(b, c):
        return (b, (c * CT + n_chunks - 1) % n_chunks, 0)

    bo, lse = pl.pallas_call(
        kernel,
        out_shape=(
            jax.ShapeDtypeStruct((BH, n_chunks, L * D), jnp.bfloat16),
            jax.ShapeDtypeStruct((BH, n_chunks, L), jnp.float32),
        ),
        grid=(BH, n_tiles),
        in_specs=[
            pl.BlockSpec((1, CT, L, D), cur4),   # qk tile
            pl.BlockSpec((1, 1, L, D), bnd4),    # qk boundary chunk
            pl.BlockSpec((1, CT, L, D), cur4),   # v tile
            pl.BlockSpec((1, 1, L, D), bnd4),    # v boundary chunk
            pl.BlockSpec((1, CT, L), cur3),      # positions (current tile)
            pl.BlockSpec((1, 1, L), bnd3),       # positions (boundary chunk)
        ],
        out_specs=(
            pl.BlockSpec((1, CT, L * D), cur3),  # lane-dense bo
            pl.BlockSpec((1, CT, L), cur3),      # lse
        ),
        compiler_params=pltpu.CompilerParams(
            dimension_semantics=("parallel", "parallel"),
            vmem_limit_bytes=vmem_limit),
    )(bqk, bqk, bv, bv, bq_t, bq_t)
    return bo, lse


def jax_chunk_attention(bqk, bv, bq_t, *, scale, causal):
    """Pure-JAX reference for the Pallas chunk-attention kernel (same bf16 math)."""
    def look_back(x):
        return jnp.concatenate([x[:, -1:], x[:, :-1]], axis=1)

    qk_f = bqk.astype(jnp.float32)
    bq = (qk_f * jnp.float32(scale)).astype(jnp.bfloat16)
    bk_n = _l2_normalize(qk_f).astype(jnp.bfloat16)
    bk = jnp.concatenate([bk_n, look_back(bk_n)], axis=2)
    bvl = jnp.concatenate([bv, look_back(bv)], axis=2)
    bkv_t = jnp.concatenate([bq_t, look_back(bq_t)], axis=2)

    dots = jnp.einsum('bcid,bcjd->bcij', bq, bk, preferred_element_type=jnp.float32)
    delta = bq_t[:, :, :, None] - bkv_t[:, :, None, :]
    if causal:
        dots = jnp.where(delta < 0, CAUSAL_MASK_VALUE, dots)
    dots = jnp.where(delta == 0, TOKEN_SELF_ATTN_VALUE, dots)

    m = jnp.max(dots, axis=-1, keepdims=True)
    e = jnp.exp(dots - m)
    s = jnp.sum(e, axis=-1, keepdims=True)
    p = (e / s).astype(jnp.bfloat16)
    bo = jnp.einsum('bcij,bcjd->bcid', p, bvl, preferred_element_type=jnp.float32)
    lse = (m + jnp.log(s))[..., 0]
    return bo.astype(jnp.bfloat16), lse


# ----------------------------------------------------------------------------------
# LSH attention (hashing / sorting glue in XLA, chunk attention in Pallas)
# ----------------------------------------------------------------------------------
def lsh_attention(qk, v, *, bucket_size, n_hashes, causal, hash_key,
                  use_pallas=True, max_chunk_tile=None):
    BH, T, D = qk.shape
    n_buckets = T // bucket_size
    assert T % (bucket_size * 2) == 0 and n_buckets % 2 == 0

    qk = qk.astype(jnp.bfloat16)
    v = v.astype(jnp.bfloat16)

    # --- hash_vectors: random-rotation LSH (rotations drawn fresh each forward) ---
    rot = jax.random.normal(hash_key, (D, n_hashes, n_buckets // 2), dtype=qk.dtype)
    rotated = jnp.einsum('btf,fhi->bhti', qk, rot)
    rotated = jnp.concatenate([rotated, -rotated], axis=-1)       # (BH, nh, T, n_buckets)
    buckets = jnp.argmax(rotated, axis=-1)                        # (BH, nh, T)
    buckets = buckets + (jnp.arange(n_hashes) * n_buckets)[None, :, None]
    buckets = buckets.reshape(BH, n_hashes * T)

    # --- sort tokens by (bucket, position) ---
    # TODO(synk): argsort / gather has no clean Pallas equivalent; done in XLA.
    total = n_hashes * T
    ticker = jnp.broadcast_to(jnp.arange(total, dtype=jnp.int32)[None, :], (BH, total))
    buckets_and_t = T * buckets + (ticker % T)
    sticker = jnp.argsort(buckets_and_t, axis=-1).astype(jnp.int32)
    undo_sort = jnp.argsort(sticker, axis=-1).astype(jnp.int32)

    st = (sticker % T).astype(jnp.int32)
    sqk = jnp.take_along_axis(qk, st[..., None], axis=1)
    sv = jnp.take_along_axis(v, st[..., None], axis=1)

    n_chunks = n_hashes * n_buckets
    L = bucket_size
    bq_t = st.reshape(BH, n_chunks, L)
    bqk = sqk.reshape(BH, n_chunks, L, D)
    bv = sv.reshape(BH, n_chunks, L, D)

    scale = D ** -0.5
    if use_pallas:
        bo, lse = pallas_chunk_attention(bqk, bv, bq_t, scale=scale, causal=causal,
                                         max_chunk_tile=max_chunk_tile)
        so = bo.reshape(BH, total, D)            # (BH, n_chunks, L*D) -> (BH, total, D)
        slogits = lse.reshape(BH, total)
    else:
        bo, lse = jax_chunk_attention(bqk, bv, bq_t, scale=scale, causal=causal)
        so = bo.reshape(BH, total, D)
        slogits = lse.reshape(BH, total)

    # --- unsort & combine the n_hashes rounds ---
    o = jnp.take_along_axis(so, undo_sort[..., None], axis=1)
    logits = jnp.take_along_axis(slogits, undo_sort, axis=1)
    o = o.reshape(BH, n_hashes, T, D)
    logits = logits.reshape(BH, n_hashes, T, 1)
    probs = jnp.exp(logits - jax.scipy.special.logsumexp(logits, axis=1, keepdims=True))
    out = jnp.sum(o.astype(jnp.float32) * probs, axis=1)   # (BH, T, D)
    return out.astype(jnp.bfloat16)


# ----------------------------------------------------------------------------------
# ReformerLayer forward
# ----------------------------------------------------------------------------------
def reformer_layer_forward(params, queries, keys=None, values=None, attn_mask=None, *,
                           n_heads, bucket_size, n_hashes, causal, hash_key,
                           use_pallas=True, max_chunk_tile=None):
    del keys, values, attn_mask  # unused by the PyTorch forward
    B, N, C = queries.shape
    H = n_heads
    dh = C // H

    # fit_length: pad sequence to a multiple of 2*bucket_size with zeros
    pad = (-N) % (2 * bucket_size)
    x = jnp.pad(queries, ((0, 0), (0, pad), (0, 0))) if pad else queries
    T = N + pad

    # pre-cast projection weights once (bf16 MXU operands, no per-step re-cast)
    w_qk = params['w_qk'].astype(jnp.bfloat16)
    w_v = params['w_v'].astype(jnp.bfloat16)
    w_out = params['w_out'].astype(jnp.bfloat16)

    x2d = x.reshape(B * T, C)
    qk = pallas_linear(x2d, w_qk, out_dtype=jnp.bfloat16).reshape(B, T, H, dh)
    v = pallas_linear(x2d, w_v, out_dtype=jnp.bfloat16).reshape(B, T, H, dh)
    qk = jnp.transpose(qk, (0, 2, 1, 3)).reshape(B * H, T, dh)   # bf16 transpose
    v = jnp.transpose(v, (0, 2, 1, 3)).reshape(B * H, T, dh)

    out_h = lsh_attention(qk, v, bucket_size=bucket_size, n_hashes=n_hashes,
                          causal=causal, hash_key=hash_key, use_pallas=use_pallas,
                          max_chunk_tile=max_chunk_tile)

    out = out_h.reshape(B, H, T, dh)
    out = jnp.transpose(out, (0, 2, 1, 3)).reshape(B * T, C)
    out = pallas_linear(out, w_out, params['b_out'],
                        out_dtype=jnp.float32).reshape(B, T, C)
    return out[:, :N, :], None


# ----------------------------------------------------------------------------------
# Demo / test
# ----------------------------------------------------------------------------------
if __name__ == "__main__":
    # NOTE: demo shapes are intentionally tiny; real configs (bucket_size>=64, dh>=64)
    # give lane-dense (>=128) tiles and representative performance.
    B, N, C = 2, 14, 32           # N=14 -> padded to 16 (= 2*bucket_size multiple)
    n_heads, bucket_size, n_hashes = 4, 4, 4
    causal = False

    root = jax.random.PRNGKey(0)
    kq, kk, kv_, kp1, kp2, kp3, kp4, khash = jax.random.split(root, 8)

    queries = jax.random.normal(kq, (B, N, C), jnp.float32)
    keys = jax.random.normal(kk, (B, N, C), jnp.float32)      # ignored
    values = jax.random.normal(kv_, (B, N, C), jnp.float32)   # ignored
    attn_mask = None                                          # ignored

    params = {
        'w_qk': jax.random.normal(kp1, (C, C), jnp.float32) / jnp.sqrt(C),
        'w_v': jax.random.normal(kp2, (C, C), jnp.float32) / jnp.sqrt(C),
        'w_out': jax.random.normal(kp3, (C, C), jnp.float32) / jnp.sqrt(C),
        'b_out': jax.random.normal(kp4, (C,), jnp.float32) * 0.01,
    }

    # max_chunk_tile=8 forces 2 chunk tiles per batch-head so the chunk-axis tiling
    # + boundary-chunk wraparound path is actually exercised in the demo.
    out, attn = reformer_layer_forward(
        params, queries, keys, values, attn_mask,
        n_heads=n_heads, bucket_size=bucket_size, n_hashes=n_hashes,
        causal=causal, hash_key=khash, use_pallas=True, max_chunk_tile=8)
    out = jax.block_until_ready(out)

    # pure-JAX reference of the hot path (same bf16 math) for a sanity check
    out_ref, _ = reformer_layer_forward(
        params, queries, keys, values, attn_mask,
        n_heads=n_heads, bucket_size=bucket_size, n_hashes=n_hashes,
        causal=causal, hash_key=khash, use_pallas=False)
    out_ref = jax.block_until_ready(out_ref)

    assert out.shape == (B, N, C)
    assert attn is None
    assert bool(jnp.all(jnp.isfinite(out)))
    assert bool(jnp.allclose(out, out_ref, rtol=2e-2, atol=2e-2))
    print("KERNEL_OK")
</pallas_src>

<mosaic_0001>
module attributes {stable_mosaic.version = 11 : i64} {
  func.func @_linear_kernel(%arg0: i32, %arg1: memref<32x32xf32, #tpu.memory_space<vmem>>, %arg2: memref<32x32xbf16, #tpu.memory_space<vmem>>, %arg3: memref<32x32xbf16, #tpu.memory_space<vmem>>) attributes {dimension_semantics = [#tpu.dimension_semantics<parallel>], iteration_bounds = array<i64: 1>, scalar_prefetch = 0 : i64, scratch_operands = 0 : i64, tpu.core_type = #tpu.core_type<tc>, window_params = [{transform_indices = @transform_0, window_bounds = array<i64: 32, 32>}, {pipeline_mode = #tpu.pipeline_mode<synchronous>, transform_indices = @transform_1, window_bounds = array<i64: 32, 32>}, {transform_indices = @transform_2, window_bounds = array<i64: 32, 32>}]} {
    %c0 = arith.constant 0 : index
    %c0_0 = arith.constant 0 : index
    %0 = vector.load %arg1[%c0, %c0_0] : memref<32x32xf32, #tpu.memory_space<vmem>>, vector<32x32xf32>
    %1 = arith.truncf %0 : vector<32x32xf32> to vector<32x32xbf16>
    %c0_1 = arith.constant 0 : index
    %c0_2 = arith.constant 0 : index
    %2 = vector.load %arg2[%c0_1, %c0_2] : memref<32x32xbf16, #tpu.memory_space<vmem>>, vector<32x32xbf16>
    %cst = arith.constant dense<0.000000e+00> : vector<32x32xf32>
    %3 = tpu.matmul %1, %2, %cst {dimension_numbers = #tpu.dot_dimension_numbers<[1], [0], [0], [1], [0, 0, 1, 1], [], []>} : vector<32x32xbf16>, vector<32x32xbf16>, vector<32x32xf32> -> vector<32x32xf32>
    %4 = arith.truncf %3 : vector<32x32xf32> to vector<32x32xbf16>
    %c0_3 = arith.constant 0 : index
    %c0_4 = arith.constant 0 : index
    %5 = vector.load %arg3[%c0_3, %c0_4] : memref<32x32xbf16, #tpu.memory_space<vmem>>, vector<32x32xbf16>
    tpu.vector_store %arg3[%c0_3, %c0_4], %4 {strides = array<i32>} : memref<32x32xbf16, #tpu.memory_space<vmem>>, vector<32x32xbf16>,
    return
  }
  func.func @transform_0(%arg0: i32) -> (i32, i32) {
    %c0_i32 = arith.constant 0 : i32
    %c0_i32_0 = arith.constant 0 : i32
    return %arg0, %c0_i32 : i32, i32
  }
  func.func @transform_1(%arg0: i32) -> (i32, i32) {
    %c0_i32 = arith.constant 0 : i32
    %c0_i32_0 = arith.constant 0 : i32
    %c0_i32_1 = arith.constant 0 : i32
    return %c0_i32, %c0_i32_0 : i32, i32
  }
  func.func @transform_2(%arg0: i32) -> (i32, i32) {
    %c0_i32 = arith.constant 0 : i32
    %c0_i32_0 = arith.constant 0 : i32
    return %arg0, %c0_i32 : i32, i32
  }
}

</mosaic_0001>

<bundles_post_ra>
// kernel: tpu_custom_call.1
= control target key start
LH: loop header
LB: loop body
LE: loop exit
PB: predicated region body
PF: predicated region fallthrough
CT: control target
= control target key end

     0   :  { %7 = vsyncpa [#allocation3], 0  ;;  %s327_s0 = inlined_call_operand.hbm [shape: f32[32,32], index: 0, kind: input, shape index: {}]   ;;  %s328_s1 = inlined_call_operand.hbm [shape: bf16[32,32], index: 1, kind: input, shape index: {}]   ;;  %s329_s2 = inlined_call_operand.hbm [shape: bf16[32,32], index: 2, kind: output, shape index: {}]  }
   0x1   :  { %8 = vsyncpa [#allocation6], 0 }
   0x2   :  { %9 = vsyncpa [#allocation4], 0  ;;  %s263_s9 = smov [#allocation2]   ;;  %s191_s13 = scalar_lea.hbm %s327_s0, 512 }
   0x3   :  { %s15_s10 = sshll.u32 %s263_s9, 4  ;;  %p192_p0 = scmp.ne.s32.totalorder %s327_s0, %s191_s13  ;;  %s16_s10 = int_to_ptr.vmem [resolvable:$true] %s15_s10 }
   0x4   :  { %p195_p1 = scmp.lt.u32.totalorder %s191_s13, %s327_s0 }
   0x6   :  { %p197_p2 = pnand %p195_p1, %p192_p0 }
   0x8   :  { %200 = shalt.err (!%p197_p2)
}
   0x9   :  { %s201_s18 = scalar_lea.vmem %s16_s10, 512  ;;  %p206_p4 = scmp.lt.s32.totalorder %s16_s10, %s16_s10 }
   0xa   :  { %p202_p3 = scmp.ne.s32.totalorder %s16_s10, %s201_s18  ;;  %p207_p5 = scmp.lt.s32.totalorder %s201_s18, %s201_s18 }
   0xc   :  { %p208_p6 = por %p207_p5, %p206_p4 }
   0xe   :  { %p209_p7 = pnand %p208_p6, %p202_p3 }
  0x10   :  { %212 = shalt.err (!%p209_p7)
}
  0x11   :  { %s264_s19 = smov 128   ;;  %s265_s20 = smov 8  }
  0x12   :  { %21 = dma.hbm_to_vmem [thread:$0]  %s327_s0, 512, %s16_s10, [#allocation3], %s264_s19, %s264_s19, %s265_s20  }
  0x13   :  { %s266_s23 = smov [#allocation5]   ;;  %s213_s27 = scalar_lea.hbm %s328_s1, 256 }
  0x14   :  { %s27_s24 = sshll.u32 %s266_s23, 4  ;;  %p214_p8 = scmp.ne.s32.totalorder %s328_s1, %s213_s27  ;;  %s28_s24 = int_to_ptr.vmem [resolvable:$true] %s27_s24 }
  0x15   :  { %p217_p9 = scmp.lt.u32.totalorder %s213_s27, %s328_s1 }
  0x17   :  { %p219_p10 = pnand %p217_p9, %p214_p8 }
  0x19   :  { %222 = shalt.err (!%p219_p10)
}
  0x1a   :  { %s223_s4 = scalar_lea.vmem %s28_s24, 256  ;;  %p228_p12 = scmp.lt.s32.totalorder %s28_s24, %s28_s24 }
  0x1b   :  { %p224_p11 = scmp.ne.s32.totalorder %s28_s24, %s223_s4  ;;  %p229_p13 = scmp.lt.s32.totalorder %s223_s4, %s223_s4 }
  0x1d   :  { %p230_p0 = por %p229_p13, %p228_p12 }
  0x1f   :  { %p231_p1 = pnand %p230_p0, %p224_p11 }
  0x21   :  { %234 = shalt.err (!%p231_p1)
}
  0x22   :  { %s267_s0 = smov 64   ;;  %s268_s5 = smov 4  }
  0x23   :  { %33 = dma.hbm_to_vmem [thread:$0]  %s328_s1, 256, %s28_s24, [#allocation6], %s267_s0, %s267_s0, %s268_s5  }
  0x24   :  { %257 = dma.done.wait [#allocation3], 512  }
  0x25   :  { %258 = vsyncadd [#allocation3], 4294966784 }
  0x26   :  { %259 = dma.done.wait [#allocation6], 256  }
  0x27   :  { %260 = vsyncadd [#allocation6], 4294967040  ;;  %v189_v0 = vld [vmem:[#allocation5] sm:$0xff]   ;;  %v190_v1 = vld [vmem:[#allocation5 + $0x8] sm:$0xff]   ;;  %vm63_vm0 = vcmask 261120   ;;  %vm135_vm1 = vcmask 257024  }
  0x28   :  { %174 = vmatprep.subr.bf16.mxu0 %v189_v0  ;;  %v41_v2 = vld [vmem:[#allocation2] sm:$0xff]  ;;  %v42_v3 = vld [vmem:[#allocation2 + $0x8] sm:$0xff]  ;;  %v43_v5 = vld [vmem:[#allocation2 + $0x10] sm:$0xff]  ;;  %s269_s1 = smov [#allocation7]  }
  0x29   :  { %175 = vmatpush3.bf16.msra.mxu0 %v189_v0  ;;  %v45_v4 = vpack.c.bf16 %v42_v3, %v41_v2  ;;  %v44_v6 = vld [vmem:[#allocation2 + $0x18] sm:$0xff]  ;;  %s145_s8 = sshll.u32 %s269_s1, 4  ;;  %s146_s8 = int_to_ptr.vmem [resolvable:$true] %s145_s8 }
  0x2a   :  { %176 = vmatprep.subr.bf16.mxu0 %v190_v1  ;;  %v46_v7 = vpack.c.bf16 %v44_v6, %v43_v5  ;;  %s235_s9 = scalar_lea.vmem %s146_s8, 256  ;;  %p240_p3 = scmp.lt.s32.totalorder %s146_s8, %s146_s8 }
  0x2b   :  { %178 = vmatprep.mubr.msk.bf16.mxu0 %vm63_vm0, %v45_v4  ;;  %p236_p2 = scmp.ne.s32.totalorder %s146_s8, %s235_s9  ;;  %p241_p4 = scmp.lt.s32.totalorder %s235_s9, %s235_s9 }
  0x2d   :  { %177 = vmatpush3.bf16.msra.mxu0 %v190_v1  ;;  %p242_p5 = por %p241_p4, %p240_p3 }
  0x2f   :  { %p243_p6 = pnand %p242_p5, %p236_p2 }
  0x30   :  { %179 = vmatmul.mubr.msk.bf16.vlgmr.msra.gmra.mrb[0].mxu0 %vm63_vm0, %v46_v7 }
 0x103   :  { %v180_v8 = vpop.f32.mrb[0].mxu0 }
 0x104   :  { %v168_v9 = vpack.c.bf16 %v180_v8, %v180_v8  ;;  %v104_v10 = vpop.f32.mrb[1].mxu0 }
 0x105   :  { %v166_v11 = vpack.c.bf16 %v104_v10, %v104_v10  ;;  %v181_v12 = vpop.f32.mrb[2].mxu0 }
 0x106   :  { %138 = vst.msk [vmem:[#allocation7 + $0x8] sm:$0xf] %vm135_vm1, %v168_v9  ;;  %v169_v13 = vpack.c.bf16 %v181_v12, %v181_v12  ;;  %v107_v14 = vpop.f32.mrb[3].mxu0 }
 0x107   :  { %136 = vst.msk [vmem:[#allocation7] sm:$0xf] %vm135_vm1, %v166_v11  ;;  %v167_v15 = vpack.c.bf16 %v107_v14, %v107_v14 }
 0x108   :  { %139 = vst.msk [vmem:[#allocation7 + $0xc] sm:$0xf] %vm135_vm1, %v169_v13 }
 0x109   :  { %137 = vst.msk [vmem:[#allocation7 + $0x4] sm:$0xf] %vm135_vm1, %v167_v15 }
 0x10a   :  { %246 = shalt.err (!%p243_p6)
}
 0x10b   :  { %s247_s12 = scalar_lea.hbm %s329_s2, 256 }
 0x10c   :  { %p248_p7 = scmp.ne.s32.totalorder %s329_s2, %s247_s12  ;;  %p251_p8 = scmp.lt.u32.totalorder %s247_s12, %s329_s2 }
 0x10e   :  { %p253_p9 = pnand %p251_p8, %p248_p7 }
 0x110   :  { %256 = shalt.err (!%p253_p9)
}
 0x111   :  { %151 = dma.vmem_to_hbm [thread:$0]  %s146_s8, 256, %s329_s2, [#allocation4], %s267_s0, %s267_s0, %s268_s5  }
 0x112   :  { %261 = dma.done.wait [#allocation4], 256  }
 0x113   :  { %262 = vsyncadd [#allocation4], 4294967040 }
 0x114   :  { %155 = vsyncpa [#allocation3], 1 }
 0x115   :  { %156 = vsyncpa [#allocation6], 1 }
 0x116   :  { %157 = vsyncpa [#allocation4], 1 }

</bundles_post_ra>
